<compile_context>
chip_gen: v6e
topology: v6e:2x2x1
jax: 0.10.0
libtpu: 0.0.40
codegen_flags: <defaults>
</compile_context>

<pallas_src>
import functools
import math

import jax
import jax.numpy as jnp
from jax import lax
from jax.experimental import pallas as pl
from jax.experimental.pallas import tpu as pltpu


def attention_head_kernel(x_ref, wqkv_ref, bqkv_ref, o_ref,
                          q_scr, k_scr, v_scr, *, scale):
    """One (batch-block, query-tile) grid cell.

    x_ref    : (Bb, S, D_in)  activations, compute dtype (e.g. bf16)
    wqkv_ref : (D_in, 3H)     fused [Wq | Wk | Wv], compute dtype
    bqkv_ref : (1, 3H)        fused [bq | bk | bv], f32
    o_ref    : (Bb, TQ, H)    output tile
    q/k/v_scr: (Bb, S, H)     per-batch-block projections (compute dtype)
    """
    qi = pl.program_id(1)
    bb, seq, d_in = x_ref.shape
    hidden = k_scr.shape[-1]
    tq = o_ref.shape[1]
    cdt = k_scr.dtype

    # Fused QKV projection, computed once per batch block (the query-tile axis
    # is innermost and "arbitrary", so qi == 0 always runs first for each block).
    @pl.when(qi == 0)
    def _():
        x2 = x_ref[...].reshape(bb * seq, d_in)            # fill the MXU M dim
        qkv = jnp.dot(x2, wqkv_ref[...],
                      preferred_element_type=jnp.float32) + bqkv_ref[...]
        qkv = qkv.reshape(bb, seq, 3 * hidden)
        # Scale Q here (S*H multiplies) instead of scaling the S*S score matrix.
        q_scr[...] = (qkv[..., :hidden] * scale).astype(cdt)
        k_scr[...] = qkv[..., hidden:2 * hidden].astype(cdt)
        v_scr[...] = qkv[..., 2 * hidden:].astype(cdt)

    # Attention for this query tile against the FULL key axis (softmax is exact;
    # no online/running-max rescaling required).
    q0 = pl.multiple_of(qi * tq, tq)
    q = q_scr[:, pl.ds(q0, tq), :]                         # (Bb, TQ, H)
    k = k_scr[...]                                         # (Bb, S, H)
    v = v_scr[...]

    # Contract last dims directly: no explicit K transpose (XLU) needed.
    scores = lax.dot_general(q, k, (((2,), (2,)), ((0,), (0,))),
                             preferred_element_type=jnp.float32)  # (Bb, TQ, S)

    m = jnp.max(scores, axis=-1, keepdims=True)
    e = jnp.exp(scores - m)
    denom = jnp.sum(e, axis=-1, keepdims=True)
    probs = e * pl.reciprocal(denom, approx=True)          # divide on the EUP slot

    out = lax.dot_general(probs.astype(cdt), v, (((2,), (1,)), ((0,), (0,))),
                          preferred_element_type=jnp.float32)     # (Bb, TQ, H)
    o_ref[...] = out.astype(o_ref.dtype)


def _pick_tile(total, target, align):
    """Largest divisor of `total` that is <= target and (== total or a multiple
    of `align`)."""
    candidates = [d for d in range(1, total + 1)
                  if total % d == 0 and (d == total or d % align == 0)]
    fitting = [d for d in candidates if d <= target]
    return max(fitting) if fitting else min(candidates)


def attention_head(x, wq, bq, wk, bk, wv, bv, *,
                   block_b=None, block_q=None, compute_dtype=jnp.bfloat16):
    """x: (B, S, D_in); w*: (D_in, H); b*: (H,). Returns (B, S, H) in x.dtype."""
    B, S, D_in = x.shape
    H = wq.shape[1]
    scale = 1.0 / math.sqrt(H)

    # Fuse the three projections: one (D_in, 3H) weight, one (1, 3H) bias.
    w_qkv = jnp.concatenate([wq, wk, wv], axis=1).astype(compute_dtype)
    b_qkv = jnp.concatenate([bq, bk, bv]).reshape(1, 3 * H).astype(jnp.float32)
    x_c = x.astype(compute_dtype)

    # Batch packing fills the MXU M dimension, but the parallel batch axis stays
    # >= 2 grid steps wide when possible so both v7x TensorCores get work.
    if block_b is None:
        rows_target = max(1, 256 // S)
        block_b = min(max(1, B // 2), rows_target) if B >= 2 else 1
    block_b = max(1, min(block_b, B))
    while B % block_b:
        block_b -= 1

    # Query tiling bounds the live score slab to (TQ, S) instead of (S, S).
    if block_q is None:
        block_q = _pick_tile(S, 256, 8)
    assert S % block_q == 0, "block_q must divide the sequence length"

    grid = (B // block_b, S // block_q)

    cbytes = jnp.dtype(compute_dtype).itemsize
    obytes = jnp.dtype(x.dtype).itemsize
    # Rough VMEM budget (double-buffered blocks + scratch + score temporaries);
    # the explicit limit is capped at 32 MiB so it is valid on v7x's 64 MiB VMEM.
    est = (2 * block_b * S * D_in * cbytes          # x block
           + 2 * D_in * 3 * H * cbytes              # fused weights
           + 2 * 3 * H * 4                          # fused bias
           + 2 * block_b * block_q * H * obytes     # output tile
           + 3 * block_b * S * H * cbytes           # q/k/v scratch
           + 4 * block_b * block_q * S * 4)         # scores / exp temporaries
    vmem_limit = int(min(max(4 * est, 8 * 2**20), 32 * 2**20))

    cost = pl.CostEstimate(
        flops=2 * B * S * D_in * 3 * H + 4 * B * S * S * H,
        transcendentals=B * S * S,
        bytes_accessed=(x_c.size * cbytes + w_qkv.size * cbytes
                        + b_qkv.size * 4 + B * S * H * obytes),
    )

    return pl.pallas_call(
        functools.partial(attention_head_kernel, scale=scale),
        out_shape=jax.ShapeDtypeStruct((B, S, H), x.dtype),
        grid_spec=pltpu.PrefetchScalarGridSpec(
            num_scalar_prefetch=0,
            grid=grid,
            in_specs=[
                pl.BlockSpec((block_b, S, D_in), lambda b, q: (b, 0, 0)),  # x
                pl.BlockSpec((D_in, 3 * H), lambda b, q: (0, 0)),          # W_qkv
                pl.BlockSpec((1, 3 * H), lambda b, q: (0, 0)),             # b_qkv
            ],
            out_specs=pl.BlockSpec((block_b, block_q, H),
                                   lambda b, q: (b, q, 0)),
            scratch_shapes=[
                pltpu.VMEM((block_b, S, H), compute_dtype),   # Q (pre-scaled)
                pltpu.VMEM((block_b, S, H), compute_dtype),   # K
                pltpu.VMEM((block_b, S, H), compute_dtype),   # V
            ],
        ),
        compiler_params=pltpu.CompilerParams(
            dimension_semantics=("parallel", "arbitrary"),
            vmem_limit_bytes=vmem_limit,
        ),
        cost_estimate=cost,
    )(x_c, w_qkv, b_qkv)


def reference_attention_head(x, wq, bq, wk, bk, wv, bv):
    """Pure-JAX reference mirroring the PyTorch forward pass."""
    H = wq.shape[1]
    q = x @ wq + bq
    k = x @ wk + bk
    v = x @ wv + bv
    scores = jnp.einsum("bsh,bth->bst", q, k) / math.sqrt(H)
    probs = jax.nn.softmax(scores, axis=-1)
    return jnp.einsum("bst,bth->bsh", probs, v)


if __name__ == "__main__":
    B, S, D_in, H = 2, 8, 32, 32

    key = jax.random.PRNGKey(0)
    kx, kq, kbq, kk, kbk, kv, kbv = jax.random.split(key, 7)

    # Deterministic parameter init (nn.Linear-style uniform bounds).
    bound = 1.0 / math.sqrt(D_in)
    x = jax.random.normal(kx, (B, S, D_in), dtype=jnp.float32)
    wq = jax.random.uniform(kq, (D_in, H), jnp.float32, -bound, bound)
    bq = jax.random.uniform(kbq, (H,), jnp.float32, -bound, bound)
    wk = jax.random.uniform(kk, (D_in, H), jnp.float32, -bound, bound)
    bk = jax.random.uniform(kbk, (H,), jnp.float32, -bound, bound)
    wv = jax.random.uniform(kv, (D_in, H), jnp.float32, -bound, bound)
    bv = jax.random.uniform(kbv, (H,), jnp.float32, -bound, bound)

    ref = reference_attention_head(x, wq, bq, wk, bk, wv, bv)

    # Fast path: bf16 operands on the MXU, f32 accumulation + f32 softmax.
    out = attention_head(x, wq, bq, wk, bk, wv, bv, compute_dtype=jnp.bfloat16)
    out = jax.block_until_ready(out)
    assert out.shape == (B, S, H)
    assert jnp.allclose(out, ref, atol=3e-2, rtol=3e-2), "bf16 kernel mismatch"

    # f32 sanity check of the kernel math (tighter tolerance).
    out_f32 = attention_head(x, wq, bq, wk, bk, wv, bv,
                             compute_dtype=jnp.float32)
    out_f32 = jax.block_until_ready(out_f32)
    assert jnp.allclose(out_f32, ref, atol=1e-2, rtol=1e-2), "f32 kernel mismatch"

    print("KERNEL_OK")
</pallas_src>

<mosaic_0001>
module attributes {stable_mosaic.version = 11 : i64} {
  func.func @attention_head_kernel(%arg0: i32, %arg1: i32, %arg2: memref<1x8x32xbf16, #tpu.memory_space<vmem>>, %arg3: memref<32x96xbf16, #tpu.memory_space<vmem>>, %arg4: memref<1x96xf32, #tpu.memory_space<vmem>>, %arg5: memref<1x8x32xf32, #tpu.memory_space<vmem>>, %arg6: memref<1x8x32xbf16, #tpu.memory_space<vmem>>, %arg7: memref<1x8x32xbf16, #tpu.memory_space<vmem>>, %arg8: memref<1x8x32xbf16, #tpu.memory_space<vmem>>) attributes {dimension_semantics = [#tpu.dimension_semantics<parallel>, #tpu.dimension_semantics<arbitrary>], iteration_bounds = array<i64: 2, 1>, scalar_prefetch = 0 : i64, scratch_operands = 3 : i64, tpu.core_type = #tpu.core_type<tc>, window_params = [{transform_indices = @transform_0, window_bounds = array<i64: 1, 8, 32>}, {pipeline_mode = #tpu.pipeline_mode<synchronous>, transform_indices = @transform_1, window_bounds = array<i64: 32, 96>}, {pipeline_mode = #tpu.pipeline_mode<synchronous>, transform_indices = @transform_2, window_bounds = array<i64: 1, 96>}, {transform_indices = @transform_3, window_bounds = array<i64: 1, 8, 32>}]} {
    %c0_i32 = arith.constant 0 : i32
    %0 = arith.cmpi eq, %arg1, %c0_i32 : i32
    %1 = arith.extui %0 : i1 to i32
    %c0_i32_0 = arith.constant 0 : i32
    %2 = arith.cmpi ne, %1, %c0_i32_0 : i32
    scf.if %2 {
      %c0_14 = arith.constant 0 : index
      %c0_15 = arith.constant 0 : index
      %c0_16 = arith.constant 0 : index
      %23 = vector.load %arg2[%c0_14, %c0_15, %c0_16] : memref<1x8x32xbf16, #tpu.memory_space<vmem>>, vector<1x8x32xbf16>
      %24 = vector.shape_cast %23 : vector<1x8x32xbf16> to vector<8x32xbf16>
      %c0_17 = arith.constant 0 : index
      %c0_18 = arith.constant 0 : index
      %25 = vector.load %arg3[%c0_17, %c0_18] : memref<32x96xbf16, #tpu.memory_space<vmem>>, vector<32x96xbf16>
      %cst_19 = arith.constant dense<0.000000e+00> : vector<8x96xf32>
      %26 = tpu.matmul %24, %25, %cst_19 {dimension_numbers = #tpu.dot_dimension_numbers<[1], [0], [0], [1], [0, 0, 1, 1], [], []>} : vector<8x32xbf16>, vector<32x96xbf16>, vector<8x96xf32> -> vector<8x96xf32>
      %c0_20 = arith.constant 0 : index
      %c0_21 = arith.constant 0 : index
      %27 = vector.load %arg4[%c0_20, %c0_21] : memref<1x96xf32, #tpu.memory_space<vmem>>, vector<1x96xf32>
      %28 = vector.broadcast %27 : vector<1x96xf32> to vector<8x96xf32>
      %29 = arith.addf %26, %28 : vector<8x96xf32>
      %30 = vector.shape_cast %29 : vector<8x96xf32> to vector<1x8x96xf32>
      %31 = vector.extract_strided_slice %30 {offsets = [0, 0, 0], sizes = [1, 8, 32], strides = [1, 1, 1]} : vector<1x8x96xf32> to vector<1x8x32xf32>
      %cst_22 = arith.constant 0.176776692 : f32
      %32 = vector.broadcast %cst_22 : f32 to vector<1x8x32xf32>
      %33 = arith.mulf %31, %32 : vector<1x8x32xf32>
      %34 = arith.truncf %33 : vector<1x8x32xf32> to vector<1x8x32xbf16>
      %c0_23 = arith.constant 0 : index
      %c0_24 = arith.constant 0 : index
      %c0_25 = arith.constant 0 : index
      %35 = vector.load %arg6[%c0_23, %c0_24, %c0_25] : memref<1x8x32xbf16, #tpu.memory_space<vmem>>, vector<1x8x32xbf16>
      tpu.vector_store %arg6[%c0_23, %c0_24, %c0_25], %34 {strides = array<i32>} : memref<1x8x32xbf16, #tpu.memory_space<vmem>>, vector<1x8x32xbf16>,
      %36 = vector.extract_strided_slice %30 {offsets = [0, 0, 32], sizes = [1, 8, 32], strides = [1, 1, 1]} : vector<1x8x96xf32> to vector<1x8x32xf32>
      %37 = arith.truncf %36 : vector<1x8x32xf32> to vector<1x8x32xbf16>
      %c0_26 = arith.constant 0 : index
      %c0_27 = arith.constant 0 : index
      %c0_28 = arith.constant 0 : index
      %38 = vector.load %arg7[%c0_26, %c0_27, %c0_28] : memref<1x8x32xbf16, #tpu.memory_space<vmem>>, vector<1x8x32xbf16>
      tpu.vector_store %arg7[%c0_26, %c0_27, %c0_28], %37 {strides = array<i32>} : memref<1x8x32xbf16, #tpu.memory_space<vmem>>, vector<1x8x32xbf16>,
      %39 = vector.extract_strided_slice %30 {offsets = [0, 0, 64], sizes = [1, 8, 32], strides = [1, 1, 1]} : vector<1x8x96xf32> to vector<1x8x32xf32>
      %40 = arith.truncf %39 : vector<1x8x32xf32> to vector<1x8x32xbf16>
      %c0_29 = arith.constant 0 : index
      %c0_30 = arith.constant 0 : index
      %c0_31 = arith.constant 0 : index
      %41 = vector.load %arg8[%c0_29, %c0_30, %c0_31] : memref<1x8x32xbf16, #tpu.memory_space<vmem>>, vector<1x8x32xbf16>
      tpu.vector_store %arg8[%c0_29, %c0_30, %c0_31], %40 {strides = array<i32>} : memref<1x8x32xbf16, #tpu.memory_space<vmem>>, vector<1x8x32xbf16>,
    } else {
    }
    %c8_i32 = arith.constant 8 : i32
    %3 = arith.muli %arg1, %c8_i32 : i32
    %4 = tpu.assume_multiple %3, 8 : i32
    %c0 = arith.constant 0 : index
    %5 = arith.index_cast %4 : i32 to index
    %c0_1 = arith.constant 0 : index
    %6 = vector.load %arg6[%c0, %5, %c0_1] : memref<1x8x32xbf16, #tpu.memory_space<vmem>>, vector<1x8x32xbf16>
    %c0_2 = arith.constant 0 : index
    %c0_3 = arith.constant 0 : index
    %c0_4 = arith.constant 0 : index
    %7 = vector.load %arg7[%c0_2, %c0_3, %c0_4] : memref<1x8x32xbf16, #tpu.memory_space<vmem>>, vector<1x8x32xbf16>
    %c0_5 = arith.constant 0 : index
    %c0_6 = arith.constant 0 : index
    %c0_7 = arith.constant 0 : index
    %8 = vector.load %arg8[%c0_5, %c0_6, %c0_7] : memref<1x8x32xbf16, #tpu.memory_space<vmem>>, vector<1x8x32xbf16>
    %cst = arith.constant dense<0.000000e+00> : vector<1x8x8xf32>
    %9 = tpu.matmul %6, %7, %cst {dimension_numbers = #tpu.dot_dimension_numbers<[2], [2], [1], [1], [0, 0, 0, 1, 1, 1], [0], [0]>} : vector<1x8x32xbf16>, vector<1x8x32xbf16>, vector<1x8x8xf32> -> vector<1x8x8xf32>
    %cst_8 = arith.constant dense<0xFF800000> : vector<1x8xf32>
    %10 = vector.multi_reduction <maximumf>, %9, %cst_8 [2] : vector<1x8x8xf32> to vector<1x8xf32>
    %11 = vector.shape_cast %10 : vector<1x8xf32> to vector<1x8x1xf32>
    %12 = vector.broadcast %11 : vector<1x8x1xf32> to vector<1x8x8xf32>
    %13 = arith.subf %9, %12 : vector<1x8x8xf32>
    %14 = math.exp %13 : vector<1x8x8xf32>
    %cst_9 = arith.constant dense<0.000000e+00> : vector<1x8xf32>
    %15 = vector.multi_reduction <add>, %14, %cst_9 [2] : vector<1x8x8xf32> to vector<1x8xf32>
    %16 = vector.shape_cast %15 : vector<1x8xf32> to vector<1x8x1xf32>
    %17 = tpu.reciprocal %16 {approx = true} : vector<1x8x1xf32> -> vector<1x8x1xf32>
    %18 = vector.broadcast %17 : vector<1x8x1xf32> to vector<1x8x8xf32>
    %19 = arith.mulf %14, %18 : vector<1x8x8xf32>
    %20 = arith.truncf %19 : vector<1x8x8xf32> to vector<1x8x8xbf16>
    %cst_10 = arith.constant dense<0.000000e+00> : vector<1x8x32xf32>
    %21 = tpu.matmul %20, %8, %cst_10 {dimension_numbers = #tpu.dot_dimension_numbers<[2], [1], [1], [2], [0, 0, 0, 1, 1, 2], [0], [0]>} : vector<1x8x8xbf16>, vector<1x8x32xbf16>, vector<1x8x32xf32> -> vector<1x8x32xf32>
    %c0_11 = arith.constant 0 : index
    %c0_12 = arith.constant 0 : index
    %c0_13 = arith.constant 0 : index
    %22 = vector.load %arg5[%c0_11, %c0_12, %c0_13] : memref<1x8x32xf32, #tpu.memory_space<vmem>>, vector<1x8x32xf32>
    tpu.vector_store %arg5[%c0_11, %c0_12, %c0_13], %21 {strides = array<i32>} : memref<1x8x32xf32, #tpu.memory_space<vmem>>, vector<1x8x32xf32>,
    return
  }
  func.func @transform_0(%arg0: i32, %arg1: i32) -> (i32, i32, i32) {
    %c0_i32 = arith.constant 0 : i32
    %c0_i32_0 = arith.constant 0 : i32
    %c0_i32_1 = arith.constant 0 : i32
    return %arg0, %c0_i32, %c0_i32_0 : i32, i32, i32
  }
  func.func @transform_1(%arg0: i32, %arg1: i32) -> (i32, i32) {
    %c0_i32 = arith.constant 0 : i32
    %c0_i32_0 = arith.constant 0 : i32
    %c0_i32_1 = arith.constant 0 : i32
    return %c0_i32, %c0_i32_0 : i32, i32
  }
  func.func @transform_2(%arg0: i32, %arg1: i32) -> (i32, i32) {
    %c0_i32 = arith.constant 0 : i32
    %c0_i32_0 = arith.constant 0 : i32
    %c0_i32_1 = arith.constant 0 : i32
    return %c0_i32, %c0_i32_0 : i32, i32
  }
  func.func @transform_3(%arg0: i32, %arg1: i32) -> (i32, i32, i32) {
    %c0_i32 = arith.constant 0 : i32
    %c0_i32_0 = arith.constant 0 : i32
    return %arg0, %arg1, %c0_i32 : i32, i32, i32
  }
}

</mosaic_0001>

<bundles_post_ra>
// kernel: tpu_custom_call.1
= control target key start
LH: loop header
LB: loop body
LE: loop exit
PB: predicated region body
PF: predicated region fallthrough
CT: control target
= control target key end

     0   :  { %8 = vsyncpa [#allocation6], 0  ;;  %s1023_s0 = inlined_call_operand.hbm [shape: bf16[2,8,32], index: 0, kind: input, shape index: {}]   ;;  %s1024_s1 = inlined_call_operand.hbm [shape: bf16[32,96], index: 1, kind: input, shape index: {}]   ;;  %s1025_s2 = inlined_call_operand.vmem [shape: f32[1,96], index: 2, kind: input, shape index: {}]   ;;  %s1026_s3 = inlined_call_operand.hbm [shape: f32[2,8,32], index: 3, kind: output, shape index: {}]  }
   0x1   :  { %10 = vsyncpa [#allocation6 + $0x1], 0 }
   0x2   :  { %11 = vsyncpa [#allocation9], 0 }
   0x3   :  { %12 = vsyncpa [#allocation7], 0 }
   0x4   :  { %14 = vsyncpa [#allocation7 + $0x1], 0  ;;  %s830_s12 = smov 0   ;;  %s832_s13 = smov 0  }
   0x5   :  { %s834_s14 = smov 0   ;;  %s836_s15 = smov 0  }
   0x6   :  { %s838_s16 = smov 0   ;;  %s840_s17 = smov 0  }
   0x7 LB: > { %s526_s18 = sadd.s32 4294967295, %s799_s17   ;;  %s527_s19 = sadd.s32 4294967294, %s799_s17   ;;  %s799_s17 = sphi %s840_s17, %s20_s17   ;;  %s795_s16 = sphi %s838_s16, %s1044_s16   ;;  %s791_s15 = sphi %s836_s15, %s1043_s15   ;;  %s787_s14 = sphi %s834_s14, %s1042_s14   ;;  %s783_s13 = sphi %s832_s13, %s1041_s13   ;;  %s779_s12 = sphi %s830_s12, %s1040_s12  }
   0x8   : > { %p52_p0 = scmp.ne.s32.totalorder %s783_s13, %s779_s12  ;;  %p864_p1 = scmp.eq.s32.totalorder %s526_s18, 0 }
   0x9   : > { %p868_p2 = scmp.eq.s32.totalorder %s526_s18, 1  ;;  %p126_p3 = scmp.eq.s32.totalorder %s527_s19, 1 }
   0xa   : > { %p874_p4 = por %p864_p1, %p52_p0  ;;  %p528_p5 = scmp.ge.s32.totalorder %s799_s17, 1 }
   0xb   : > { %p879_p6 = por %p126_p3, %p52_p0  ;;  %p133_p7 = scmp.lt.s32.totalorder %s799_s17, 3 }
   0xc   : > { %s1030_s22 = scalar_select %p874_p4, 1, 0 }
   0xd   : > { %s1031_s23 = scalar_select %p879_p6, 1, 0 }
   0xe   : > { %p884_p8 = pnand %p528_p5, %p133_p7  ;;  %s801_s25 = smov [#allocation8]  }
   0xf   : > { %s145_s26 = sshll.u32 %s801_s25, 4  ;;  %s32_s28 = sadd.s32 1, %s795_s16  ;;  %s146_s26 = int_to_ptr.vmem [resolvable:$true] %s145_s26 }
  0x10   : > { %p584_p9 = pneg %p884_p8  ;;  %s672_s29 = scalar_lea.vmem %s146_s26, 256 }
  0x11   : > { %p673_p13 = scmp.ne.s32.totalorder %s146_s26, %s672_s29  ;;  %p680_p5 = scmp.lt.s32.totalorder %s146_s26, %s146_s26 }
  0x12   : > { %p893_p11 = pnand %p584_p9, %p864_p1  ;;  %p681_p7 = scmp.lt.s32.totalorder %s672_s29, %s672_s29 }
  0x14   : > { %p663_p12 = pneg %p893_p11  ;;  %p682_p6 = por %p681_p7, %p680_p5 }
  0x16   : > { %p675_p0 = pnand %p673_p13, %p663_p12 }
  0x18   : > { %p676_p3 = pneg %p675_p0 }
  0x1a   : > { %p683_p4 = pnand %p682_p6, %p676_p3 }
  0x1c   : > { %686 = shalt.err (!%p683_p4)
}
  0x1d   : > { %s802_s30 = smov 64   ;;  %s803_s4 = smov 4  }
  0x1e   : > { %587 = dma.hbm_to_vmem [thread:$0]  (!%p893_p11), %s1024_s1, 256, %s146_s26, [#allocation9], %s802_s30, %s802_s30, %s803_s4  }
  0x1f   : > { %p34_p6 = scmp.ge.s32.totalorder %s32_s28, 2  ;;  %s39_s7 = sadd.s32 1, %s787_s14 }
  0x20   : > { %p46_p4 = scmp.ne.s32.totalorder %s787_s14, %s783_s13  ;;  %p47_p9 = scmp.eq.s32.totalorder %s799_s17, 0 }
  0x21   : > { %s1046_s28 = smov (%p34_p6, %s32_s28), 0  ;;  %p597_p0 = scmp.lt.s32.totalorder %s799_s17, 2 }
  0x22   : > { %p911_p12 = por %p47_p9, %p46_p4  ;;  %p917_p13 = por %p868_p2, %p46_p4 }
  0x23   : > { %s36_s10 = ssub.s32 %s795_s16, %s1046_s28  ;;  %s162_s11 = sand.u32 1, %s787_s14  }
  0x24   : > { %p37_p11 = scmp.eq.s32.totalorder %s36_s10, 0  ;;  %s531_s18 = sshll.u32 %s162_s11, 2 }
  0x25   : > { %s532_s25 = sshll.u32 %s795_s16, 6  ;;  %s166_s30 = scalar_lea.vmem [#allocation5], %s531_s18 }
  0x26   : > { %s926_s19 = scalar_select %p37_p11, %s787_s14, %s39_s7  }
  0x27   : > { %s171_s29 = scalar_lea.hbm %s1023_s0, %s532_s25  ;;  %s173_s4 = sshll.u32 %s166_s30, 4  ;;  %s174_s4 = int_to_ptr.vmem [resolvable:$true] %s173_s4 }
  0x28   : > { %p934_p2 = pnand %p597_p0, %p911_p12  ;;  %s163_s5 = scalar_lea.sflag [#allocation6], %s162_s11 }
  0x29   : > { %s700_s6 = scalar_lea.vmem %s174_s4, 64  ;;  %s804_s7 = smov [#allocation5]  }
  0x2a   : > { %p689_p3 = pneg %p934_p2  ;;  %p701_p5 = scmp.ne.s32.totalorder %s174_s4, %s700_s6 }
  0x2b   : > { %s705_s10 = sshll.u32 %s804_s7, 4  ;;  %s706_s10 = int_to_ptr.vmem [resolvable:$false] %s705_s10 }
  0x2c   : > { %p703_p7 = pnand %p701_p5, %p689_p3  ;;  %s707_s25 = scalar_lea.vmem %s706_s10, 128 }
  0x2d   : > { %p708_p4 = scmp.lt.s32.totalorder %s174_s4, %s706_s10  ;;  %p709_p9 = scmp.lt.s32.totalorder %s707_s25, %s700_s6 }
  0x2e   : > { %p704_p6 = pneg %p703_p7 }
  0x2f   : > { %p710_p11 = por %p709_p9, %p708_p4 }
  0x31   : > { %p711_p10 = pnand %p710_p11, %p704_p6 }
  0x33   : > { %714 = shalt.err (!%p711_p10)
}
  0x34   : > { %591 = dma.hbm_to_vmem [thread:$0]  (!%p934_p2), %s171_s29, 64, %s174_s4, %s163_s5  }
  0x35   : > { %182 = sbr.rel (%p884_p8) target bundleno = 1115 (0x45b), region = 32  ;;  %s945_s8 = sand.u32 (!%p884_p8), 1, %s783_s13  }
  0x36   : > { %s534_s11 = sshll.u32 (!%p884_p8), %s945_s8, 2  ;;  %s185_s18 = scalar_lea.sflag (!%p884_p8), [#allocation6], %s945_s8 }
  0x37   : > { %s188_s26 = scalar_lea.vmem (!%p884_p8), [#allocation5], %s534_s11  ;;  %p1037_p12 = scmp.ne.s32.totalorder (!%p884_p8), %s1030_s22, 0 }
  0x3a   : > { %766 = dma.done.wait (%p1037_p12), %s185_s18, 64  }
  0x3b   : > { %768 = vsyncadd (%p1037_p12), %s185_s18, 4294967232 }
  0x3c   : > { %770 = dma.done.wait (%p864_p1), [#allocation9], 256  }
  0x3d   : > { %772 = vsyncadd (%p864_p1), [#allocation9], 4294967040  ;;  %v805_v0 = vmov 0.0   ;;  %vm806_vm0 = vmmov 0   ;;  %v655_v1 = vld [vmem:[#allocation8 + $0x8] sm:$0xff]   ;;  %v656_v2 = vld [vmem:[#allocation8] sm:$0xff]  }
  0x3e   : > { %556 = vmatprep.subr.bf16.mxu0 %v805_v0  ;;  %560 = vmatprep.mubr.msk.bf16.mxu0 %vm806_vm0, %v805_v0  ;;  %v220_v3 = vld [vmem:[%s188_s26] sm:$0xf]  ;;  %vm244_vm1 = vcmask 261120   ;;  %v537_v4 = vld [vmem:[%s1025_s2] ss:$0 sm:$0xff]  ;;  %vm290_vm2 = vcmask 257024  }
  0x3f   : > { %564 = vmatprep.subr.bf16.mxu1 %v805_v0  ;;  %566 = vmatprep.mubr.msk.bf16.mxu1 %vm806_vm0, %v805_v0  ;;  %s807_s24 = smov 96   ;;  %vm359_vm3 = vcmask 64512   ;;  %s808_s27 = smov 64   ;;  %vm375_vm4 = vcmask 1043456  }
  0x40   : > { %557 = vmatpush3.bf16.msra.mxu0 %v655_v1  ;;  %s536_s29 = sshll.u32 %s945_s8, 3  ;;  %s545_s30 = sshll.u32 %s791_s15, 7 }
  0x41   : > { %558 = vmatprep.subr.bf16.mxu0 %v805_v0  ;;  %s214_s4 = scalar_lea.vmem [#allocation10], %s536_s29  ;;  %s974_s7 = scalar_lea.hbm %s1026_s3, %s545_s30 }
  0x42   : > { %s435_s21 = sshll.u32 %s214_s4, 4  ;;  %s421_s10 = scalar_lea.sflag [#allocation7], %s945_s8  ;;  %s976_s21 = int_to_ptr.vmem [resolvable:$true] %s435_s21 }
  0x43   : > { %s715_s25 = scalar_lea.vmem %s976_s21, 128  ;;  %s809_s15 = smov [#allocation10]  }
  0x44   : > { %559 = vmatpush3.bf16.msra.mxu0 %v656_v2  ;;  %p716_p1 = scmp.ne.s32.totalorder %s976_s21, %s715_s25  ;;  %s719_s11 = sshll.u32 %s809_s15, 4  ;;  %s720_s11 = int_to_ptr.vmem [resolvable:$false] %s719_s11 }
  0x45   : > { %570 = vmatprep.subr.bf16.mxu0 %v805_v0  ;;  %s721_s18 = scalar_lea.vmem %s720_s11, 256  ;;  %p722_p0 = scmp.lt.s32.totalorder %s976_s21, %s720_s11 }
  0x46   : > { %p717_p8 = pnand %p716_p1, %p917_p13  ;;  %p723_p2 = scmp.lt.s32.totalorder %s721_s18, %s715_s25 }
  0x47   : > { %561 = vmatmul.mubr.msk.bf16.vlgmr.msra.gmra.mxu0 %vm244_vm1, %v220_v3 }
  0x48   : > { %572 = vmatprep.mubr.msk.bf16.mxu0 %vm806_vm0, %v805_v0  ;;  %p718_p10 = pneg %p717_p8  ;;  %p724_p3 = por %p723_p2, %p722_p0 }
  0x4a   : > { %p725_p5 = pnand %p724_p3, %p718_p10 }
 0x107   : > { %v282_v5 = vpop.f32.mrf.mxu0 }
 0x108   : > { %v283_v6 = vadd.f32 %v537_v4, %v282_v5 }
 0x109   : > { %v562_v7 = vpop.f32.mrf.mxu0 }
 0x10a   : > { %v288_v8 = vmul.f32 0.17677669, %v283_v6  ;;  %v548_v9 = vpack.c.bf16 %v283_v6, %v283_v6 }
 0x10b   : > { %v285_v10 = vpop.f32.mrf.mxu0 }
 0x10c   : > { %v289_v11 = vpack.c.bf16 %v288_v8, %v288_v8  ;;  %296 = vrot.lane.b32.xlu0 %v548_v9, %s807_s24 }
 0x10d   : > { %v563_v12 = vpop.f32.mrf.mxu0 }
 0x10e   : > { %291 = vst.msk [vmem:[#allocation2] sm:$0xf] %vm290_vm2, %v289_v11 }
 0x115   : > { %v309_v16 = vld [vmem:[#allocation2] sm:$0xf] }
 0x17e   : > { %v297_v13 = vpop.permute.xlu0 %296 }
 0x17f   : > { %299 = vst.msk [vmem:[#allocation3] sm:$0xf] %vm290_vm2, %v297_v13 }
 0x186   : > { %v310_v14 = vld [vmem:[#allocation3] sm:$0xf] }
 0x187   : > { %v317_v15 = vsel %vm244_vm1, %v310_v14, 0 }
 0x188   : > { %565 = vmatpush3.bf16.xpose.msra.mxu1 %v317_v15 }
 0x18f   : > { %567 = vmatmul.mubr.msk.bf16.vlgmr.msra.gmra.mxu1 %vm244_vm1, %v309_v16 }
 0x24f   : > { %v353_v17 = vpop.f32.mrf.mxu1 }
 0x250   : > { %v360_v18 = vsel %vm359_vm3, %v353_v17, -inf }
 0x251   : > { %361 = vmax.xlane.f32.xlu0 %v360_v18  ;;  %v568_v19 = vpop.f32.mrf.mxu1 }
 0x253   : > { %v356_v20 = vpop.f32.mrf.mxu1 }
 0x255   : > { %v569_v21 = vpop.f32.mrf.mxu1 }
 0x2da   : > { %v362_v22 = vpop.xlane.xlu0 %361 }
 0x2db   : > { %v363_v23 = vsub.f32 %v353_v17, %v362_v22 }
 0x2dd   : > { %v364_v24 = vmul.f32 1.442695, %v363_v23 }
 0x2df   : > { %657 = vpow2.f32 %v364_v24 }
 0x2ec   : > { %v658_v25 = vpop.eup %657 }
 0x2ed   : > { %v366_v26 = vsel %vm359_vm3, %v658_v25, 0.0 }
 0x2ee   : > { %367 = vadd.xlane.f32.xlu1 %v366_v26 }
 0x2ff   : > { %300 = vrot.lane.b32.xlu1 %v548_v9, %s808_s27 }
 0x377   : > { %v368_v27 = vpop.xlane.xlu1 %367 }
 0x378   : > { %659 = vrcp.f32 %v368_v27 }
 0x37b   : > { %v301_v28 = vpop.permute.xlu1 %300 }
 0x37c   : > { %303 = vst.msk [vmem:[#allocation4] sm:$0xf] %vm290_vm2, %v301_v28 }
 0x383   : > { %v311_v29 = vld [vmem:[#allocation4] sm:$0xf] }
 0x384   : > { %v377_v30 = vsel %vm375_vm4, %v311_v29, 0 }
 0x385   : > { %v660_v31 = vpop.eup %659  ;;  %571 = vmatpush3.bf16.msra.mxu0 %v377_v30 }
 0x386   : > { %v370_v32 = vmul.f32 %v660_v31, %v658_v25 }
 0x388   : > { %v371_v33 = vpack.c.bf16 %v370_v32, %v370_v32 }
 0x38a   : > { %573 = vmatmul.mubr.msk.bf16.vlgmr.msra.gmra.mxu0 %vm359_vm3, %v371_v33 }
 0x44a   : > { %v413_v34 = vpop.f32.mrf.mxu0 }
 0x44b   : > { %419 = vst.msk [vmem:[%s214_s4] sm:$0xff] %vm244_vm1, %v413_v34 }
 0x44c   : > { %v574_v35 = vpop.f32.mrf.mxu0 }
 0x44d   : > { %728 = shalt.err (!%p725_p5)
}
 0x44e   : > { %s729_s26 = scalar_lea.hbm %s974_s7, 128  ;;  %s733_s20 = scalar_lea.hbm %s1026_s3, 256 }
 0x44f   : > { %p730_p7 = scmp.ne.s32.totalorder %s974_s7, %s729_s26  ;;  %p734_p9 = scmp.lt.s32.totalorder %s974_s7, %s1026_s3 }
 0x450   : > { %p735_p11 = scmp.lt.s32.totalorder %s733_s20, %s729_s26 }
 0x451   : > { %p731_p6 = pnand %p730_p7, %p917_p13 }
 0x452   : > { %p736_p12 = por %p735_p11, %p734_p9 }
 0x453   : > { %p732_p4 = pneg %p731_p6 }
 0x455   : > { %p737_p1 = pnand %p736_p12, %p732_p4 }
 0x457   : > { %740 = shalt.err (!%p737_p1)
}
 0x458   : > { %582 = dma.vmem_to_hbm [thread:$0]  (%p917_p13), %s976_s21, 128, %s974_s7, %s421_s10   ;;  %v416_v36 = vpop.f32.mrf.mxu0 }
 0x45a   : > { %v575_v37 = vpop.f32.mrf.mxu0 }
 0x45b PF: > { %s447_s29 = sand.u32 1, %s779_s12   ;;  %p1038_p8 = scmp.ne.s32.totalorder %s1031_s23, 0 }
 0x45c   : > { %p1039_p10 = scmp.ge.s32.totalorder %s799_s17, 2  ;;  %s448_s30 = scalar_lea.sflag [#allocation7], %s447_s29 }
 0x45e   : > { %p593_p0 = pnand %p1039_p10, %p1038_p8 }
 0x460   : > { %p594_p2 = pneg %p593_p0 }
 0x462   : > { %774 = dma.done.wait (%p594_p2), %s448_s30, 128  }
 0x463   : > { %776 = vsyncadd (%p594_p2), %s448_s30, 4294967168  ;;  %s20_s17 = sadd.s32 1, %s799_s17   ;;  %s1040_s12 = smov %s783_s13 }
 0x464   : > { %p17_p3 = scmp.ge.s32.totalorder %s20_s17, 4   ;;  %s1041_s13 = smov %s787_s14 }
 0x465   : > { %s1042_s14 = smov %s926_s19  ;;  %s1043_s15 = smov %s795_s16 }
 0x466   : > { %s1044_s16 = smov %s1046_s28  ;;  %19 = sbr.rel (!%p17_p3) target bundleno = 7 (0x7), region = 86 }
 0x46b   :  { %453 = vsyncpa [#allocation6], 1 }
 0x46c   :  { %455 = vsyncpa [#allocation6 + $0x1], 1 }
 0x46d   :  { %456 = vsyncpa [#allocation9], 1 }
 0x46e   :  { %457 = vsyncpa [#allocation7], 1 }
 0x46f   :  { %459 = vsyncpa [#allocation7 + $0x1], 1 }

</bundles_post_ra>
